<compile_context>
chip_gen: v6e
topology: v6e:2x2x1
jax: 0.10.0
libtpu: 0.0.40
codegen_flags: <defaults>
</compile_context>

<pallas_src>
import functools

import jax
import jax.numpy as jnp
from jax import lax
from jax.experimental import pallas as pl
from jax.experimental.pallas import tpu as pltpu


def _gru_recurrent_kernel(gi_ref, whh_ref, bhn_ref, full_ref, h_scratch, *,
                          hidden_size, chunk):
    """One grid step == (batch block b, chunk c of `chunk` timesteps).

    gi_ref:    (Tc, Bb, 3H) bf16  precomputed input pre-activations (biases folded)
    whh_ref:   (H, 3H)      bf16  W_hh^T, VMEM-resident across all grid steps
    bhn_ref:   (1, H)       f32   b_hn (multiplied by r -> cannot be pre-folded)
    full_ref:  (Tc, Bb, H)  f32   time-major output block (one HBM writeback/chunk)
    h_scratch: (Bb, H)      f32   hidden state carried across the chunk axis
    """
    H = hidden_size
    Bb = h_scratch.shape[0]
    c = pl.program_id(1)                       # sequential chunk axis

    @pl.when(c == 0)
    def _():
        h_scratch[...] = jnp.zeros_like(h_scratch)

    # Hoisted out of the timestep loop (JAX does not CSE broadcast_in_dim).
    whh = whh_ref[...]                                       # (H, 3H) bf16
    bhn = jnp.broadcast_to(bhn_ref[...], (Bb, H))            # (Bb, H) f32

    def step(i, h):
        gi_t = gi_ref[i].astype(jnp.float32)                 # dense (Bb, 3H) load
        gh = jnp.dot(h.astype(jnp.bfloat16), whh,
                     preferred_element_type=jnp.float32)     # (Bb, 3H) f32 acc
        r = jax.nn.sigmoid(gi_t[:, :H] + gh[:, :H])
        z = jax.nn.sigmoid(gi_t[:, H:2 * H] + gh[:, H:2 * H])
        n = jnp.tanh(gi_t[:, 2 * H:] + r * (gh[:, 2 * H:] + bhn))
        h_new = (1.0 - z) * n + z * h
        full_ref[i] = h_new.astype(full_ref.dtype)           # dense (Bb, H) store
        return h_new

    # Partial unroll: keeps LLO scheduling visibility without blowing vreg pressure.
    h = lax.fori_loop(0, chunk, step, h_scratch[...], unroll=min(8, chunk))
    h_scratch[...] = h


def _pick_chunk(T, Bb, H, *, vmem_budget_bytes=24 * 1024 * 1024):
    """Largest Tc whose double-buffered in/out blocks (+ weights + state) fit a
    conservative VMEM budget (safe for v7x's 32 MiB default scoped VMEM)."""
    per_t = 2 * Bb * 3 * H * 2 + 2 * Bb * H * 4      # bf16 GI in + f32 out, x2 buffers
    fixed = 2 * H * 3 * H * 2 + Bb * H * 4           # W_hh^T (x2 bufs, bf16) + state
    tc_max = max(1, (vmem_budget_bytes - fixed) // per_t)
    cap = min(tc_max, 128)                            # ~0.35us/step overhead amortized
    if T <= cap:
        return T
    return max(8, int(cap // 8) * 8)


def gru_forward(x, w_ih, w_hh, b_ih, b_hh):
    """x: (B, T, I). Weights in PyTorch layout:
       w_ih (3H, I), w_hh (3H, H), b_ih (3H,), b_hh (3H,).
       Returns (full (B, T, H), last (1, B, H)) — matching torch.nn.GRU."""
    B, T, I = x.shape
    H = w_hh.shape[1]
    f32, bf16 = jnp.float32, jnp.bfloat16

    x = x.astype(f32)
    w_ih = w_ih.astype(f32)
    w_hh = w_hh.astype(f32)
    b_ih = b_ih.astype(f32)
    b_hh = b_hh.astype(f32)

    # Fold b_ih (all gates) + b_hr/b_hz into GI; only b_hn stays in-kernel.
    b_fold = jnp.concatenate([b_ih[:2 * H] + b_hh[:2 * H], b_ih[2 * H:]])    # (3H,)

    # Hoisted input projection, emitted directly time-major (T, B, 3H), then cast
    # to bf16 for the kernel (halves GI HBM traffic; MXU operands are bf16-native).
    gi = jnp.einsum('bti,gi->tbg', x, w_ih) + b_fold                          # (T, B, 3H)
    gi = gi.astype(bf16)

    # Optional batch split for v7x's 2 TensorCores; requires lane/sublane-aligned
    # batch sub-blocks, otherwise keep the whole batch in one block.
    if B >= 16 and B % 16 == 0 and (3 * H) % 128 == 0 and H % 128 == 0:
        Bb = B // 2
    else:
        Bb = B
    n_b = B // Bb

    Tc = _pick_chunk(T, Bb, H)
    T_pad = ((T + Tc - 1) // Tc) * Tc
    if T_pad != T:
        # Padded steps run with zero gate inputs and are sliced off afterwards.
        gi = jnp.pad(gi, ((0, T_pad - T), (0, 0), (0, 0)))

    whh_t = w_hh.T.astype(bf16)                 # (H, 3H)
    bhn = b_hh[2 * H:].reshape(1, H)            # (1, H) f32

    kernel = functools.partial(_gru_recurrent_kernel, hidden_size=H, chunk=Tc)

    full_tm = pl.pallas_call(
        kernel,
        out_shape=jax.ShapeDtypeStruct((T_pad, B, H), f32),
        grid_spec=pltpu.PrefetchScalarGridSpec(
            num_scalar_prefetch=0,
            grid=(n_b, T_pad // Tc),            # (parallel batch, sequential chunks)
            in_specs=[
                pl.BlockSpec((Tc, Bb, 3 * H), lambda b, c: (c, b, 0)),   # GI chunk
                pl.BlockSpec((H, 3 * H), lambda b, c: (0, 0)),           # W_hh^T resident
                pl.BlockSpec((1, H), lambda b, c: (0, 0)),               # b_hn
            ],
            out_specs=pl.BlockSpec((Tc, Bb, H), lambda b, c: (c, b, 0)),  # time-major out
            scratch_shapes=[pltpu.VMEM((Bb, H), f32)],                    # hidden state
        ),
        compiler_params=pltpu.CompilerParams(
            dimension_semantics=("parallel", "arbitrary"),
            vmem_limit_bytes=32 * 1024 * 1024,
        ),
    )(gi, whh_t, bhn)

    full = jnp.transpose(full_tm[:T], (1, 0, 2))    # back to batch-first (B, T, H)
    last = full[:, T - 1][None]                     # (1, B, H) == torch h_n
    return full, last


def gru_reference(x, w_ih, w_hh, b_ih, b_hh):
    """Pure-JAX f32 reference (lax.scan) matching torch.nn.GRU semantics."""
    B, T, I = x.shape
    H = w_hh.shape[1]
    wih_t = w_ih.T
    whh_t = w_hh.T

    def step(h, x_t):
        gi = x_t @ wih_t + b_ih
        gh = h @ whh_t + b_hh
        r = jax.nn.sigmoid(gi[:, 0:H] + gh[:, 0:H])
        z = jax.nn.sigmoid(gi[:, H:2 * H] + gh[:, H:2 * H])
        n = jnp.tanh(gi[:, 2 * H:3 * H] + r * gh[:, 2 * H:3 * H])
        h_new = (1.0 - z) * n + z * h
        return h_new, h_new

    h0 = jnp.zeros((B, H), jnp.float32)
    h_last, ys = lax.scan(step, h0, jnp.transpose(x, (1, 0, 2)))
    return jnp.transpose(ys, (1, 0, 2)), h_last[None]


if __name__ == "__main__":
    # Small shapes consistent with the module: batch=2, seq=8, input=4, hidden=32.
    B, T, I, H = 2, 8, 4, 32

    key = jax.random.PRNGKey(0)
    kx, k1, k2, k3, k4 = jax.random.split(key, 5)

    # Deterministic parameter init (PyTorch GRU default: U(-1/sqrt(H), 1/sqrt(H))).
    bound = 1.0 / jnp.sqrt(jnp.float32(H))
    w_ih = jax.random.uniform(k1, (3 * H, I), jnp.float32, -bound, bound)
    w_hh = jax.random.uniform(k2, (3 * H, H), jnp.float32, -bound, bound)
    b_ih = jax.random.uniform(k3, (3 * H,), jnp.float32, -bound, bound)
    b_hh = jax.random.uniform(k4, (3 * H,), jnp.float32, -bound, bound)

    x = jax.random.normal(kx, (B, T, I), jnp.float32)

    full, last = gru_forward(x, w_ih, w_hh, b_ih, b_hh)
    jax.block_until_ready((full, last))

    full_ref, last_ref = gru_reference(x, w_ih, w_hh, b_ih, b_hh)
    assert full.shape == (B, T, H) and last.shape == (1, B, H)
    # bf16 MXU operands (f32 accumulation/state) -> loosened tolerance vs f32 ref.
    assert jnp.allclose(full, full_ref, rtol=5e-2, atol=5e-2)
    assert jnp.allclose(last, last_ref, rtol=5e-2, atol=5e-2)

    print("KERNEL_OK")
</pallas_src>

<mosaic_0001>
module attributes {stable_mosaic.version = 11 : i64} {
  func.func @_gru_recurrent_kernel(%arg0: i32, %arg1: i32, %arg2: memref<8x2x96xbf16, #tpu.memory_space<vmem>>, %arg3: memref<32x96xbf16, #tpu.memory_space<vmem>>, %arg4: memref<1x32xf32, #tpu.memory_space<vmem>>, %arg5: memref<8x2x32xf32, #tpu.memory_space<vmem>>, %arg6: memref<2x32xf32, #tpu.memory_space<vmem>>) attributes {dimension_semantics = [#tpu.dimension_semantics<parallel>, #tpu.dimension_semantics<arbitrary>], iteration_bounds = array<i64: 1, 1>, scalar_prefetch = 0 : i64, scratch_operands = 1 : i64, tpu.core_type = #tpu.core_type<tc>, window_params = [{transform_indices = @transform_0, window_bounds = array<i64: 8, 2, 96>}, {pipeline_mode = #tpu.pipeline_mode<synchronous>, transform_indices = @transform_1, window_bounds = array<i64: 32, 96>}, {pipeline_mode = #tpu.pipeline_mode<synchronous>, transform_indices = @transform_2, window_bounds = array<i64: 1, 32>}, {transform_indices = @transform_3, window_bounds = array<i64: 8, 2, 32>}]} {
    %c0_i32 = arith.constant 0 : i32
    %0 = arith.cmpi eq, %arg1, %c0_i32 : i32
    %1 = arith.extui %0 : i1 to i32
    %c0_i32_0 = arith.constant 0 : i32
    %2 = arith.cmpi ne, %1, %c0_i32_0 : i32
    scf.if %2 {
      %cst_72 = arith.constant 0.000000e+00 : f32
      %305 = vector.broadcast %cst_72 : f32 to vector<2x32xf32>
      %c0_73 = arith.constant 0 : index
      %c0_74 = arith.constant 0 : index
      %306 = vector.load %arg6[%c0_73, %c0_74] : memref<2x32xf32, #tpu.memory_space<vmem>>, vector<2x32xf32>
      tpu.vector_store %arg6[%c0_73, %c0_74], %305 {strides = array<i32>} : memref<2x32xf32, #tpu.memory_space<vmem>>, vector<2x32xf32>,
    } else {
    }
    %c0 = arith.constant 0 : index
    %c0_1 = arith.constant 0 : index
    %3 = vector.load %arg3[%c0, %c0_1] : memref<32x96xbf16, #tpu.memory_space<vmem>>, vector<32x96xbf16>
    %c0_2 = arith.constant 0 : index
    %c0_3 = arith.constant 0 : index
    %4 = vector.load %arg4[%c0_2, %c0_3] : memref<1x32xf32, #tpu.memory_space<vmem>>, vector<1x32xf32>
    %5 = vector.shape_cast %4 : vector<1x32xf32> to vector<1x32xf32>
    %6 = vector.broadcast %5 : vector<1x32xf32> to vector<2x32xf32>
    %c0_4 = arith.constant 0 : index
    %c0_5 = arith.constant 0 : index
    %7 = vector.load %arg6[%c0_4, %c0_5] : memref<2x32xf32, #tpu.memory_space<vmem>>, vector<2x32xf32>
    %c0_i32_6 = arith.constant 0 : i32
    %8 = arith.index_cast %c0_i32_6 : i32 to index
    %c0_7 = arith.constant 0 : index
    %c0_8 = arith.constant 0 : index
    %9 = vector.load %arg2[%8, %c0_7, %c0_8] : memref<8x2x96xbf16, #tpu.memory_space<vmem>>, vector<1x2x96xbf16>
    %10 = vector.shape_cast %9 : vector<1x2x96xbf16> to vector<2x96xbf16>
    %11 = arith.extf %10 : vector<2x96xbf16> to vector<2x96xf32>
    %12 = arith.truncf %7 : vector<2x32xf32> to vector<2x32xbf16>
    %cst = arith.constant dense<0.000000e+00> : vector<2x96xf32>
    %13 = tpu.matmul %12, %3, %cst {dimension_numbers = #tpu.dot_dimension_numbers<[1], [0], [0], [1], [0, 0, 1, 1], [], []>} : vector<2x32xbf16>, vector<32x96xbf16>, vector<2x96xf32> -> vector<2x96xf32>
    %14 = vector.extract_strided_slice %11 {offsets = [0, 0], sizes = [2, 32], strides = [1, 1]} : vector<2x96xf32> to vector<2x32xf32>
    %15 = vector.extract_strided_slice %13 {offsets = [0, 0], sizes = [2, 32], strides = [1, 1]} : vector<2x96xf32> to vector<2x32xf32>
    %16 = arith.addf %14, %15 : vector<2x32xf32>
    %17 = arith.negf %16 : vector<2x32xf32>
    %18 = math.exp %17 : vector<2x32xf32>
    %cst_9 = arith.constant 1.000000e+00 : f32
    %19 = vector.broadcast %cst_9 : f32 to vector<2x32xf32>
    %20 = arith.addf %19, %18 : vector<2x32xf32>
    %21 = arith.divf %19, %20 : vector<2x32xf32>
    %22 = vector.extract_strided_slice %11 {offsets = [0, 32], sizes = [2, 32], strides = [1, 1]} : vector<2x96xf32> to vector<2x32xf32>
    %23 = vector.extract_strided_slice %13 {offsets = [0, 32], sizes = [2, 32], strides = [1, 1]} : vector<2x96xf32> to vector<2x32xf32>
    %24 = arith.addf %22, %23 : vector<2x32xf32>
    %25 = arith.negf %24 : vector<2x32xf32>
    %26 = math.exp %25 : vector<2x32xf32>
    %cst_10 = arith.constant 1.000000e+00 : f32
    %27 = vector.broadcast %cst_10 : f32 to vector<2x32xf32>
    %28 = arith.addf %27, %26 : vector<2x32xf32>
    %29 = arith.divf %27, %28 : vector<2x32xf32>
    %30 = vector.extract_strided_slice %11 {offsets = [0, 64], sizes = [2, 32], strides = [1, 1]} : vector<2x96xf32> to vector<2x32xf32>
    %31 = vector.extract_strided_slice %13 {offsets = [0, 64], sizes = [2, 32], strides = [1, 1]} : vector<2x96xf32> to vector<2x32xf32>
    %32 = arith.addf %31, %6 : vector<2x32xf32>
    %33 = arith.mulf %21, %32 : vector<2x32xf32>
    %34 = arith.addf %30, %33 : vector<2x32xf32>
    %35 = math.tanh %34 : vector<2x32xf32>
    %cst_11 = arith.constant 1.000000e+00 : f32
    %36 = vector.broadcast %cst_11 : f32 to vector<2x32xf32>
    %37 = arith.subf %36, %29 : vector<2x32xf32>
    %38 = arith.mulf %37, %35 : vector<2x32xf32>
    %39 = arith.mulf %29, %7 : vector<2x32xf32>
    %40 = arith.addf %38, %39 : vector<2x32xf32>
    %41 = arith.index_cast %c0_i32_6 : i32 to index
    %c0_12 = arith.constant 0 : index
    %c0_13 = arith.constant 0 : index
    %42 = vector.load %arg5[%41, %c0_12, %c0_13] : memref<8x2x32xf32, #tpu.memory_space<vmem>>, vector<1x2x32xf32>
    %43 = vector.shape_cast %42 : vector<1x2x32xf32> to vector<2x32xf32>
    %44 = vector.shape_cast %40 : vector<2x32xf32> to vector<1x2x32xf32>
    tpu.vector_store %arg5[%41, %c0_12, %c0_13], %44 {strides = array<i32>} : memref<8x2x32xf32, #tpu.memory_space<vmem>>, vector<1x2x32xf32>,
    %c1_i32 = arith.constant 1 : i32
    %45 = arith.index_cast %c1_i32 : i32 to index
    %c0_14 = arith.constant 0 : index
    %c0_15 = arith.constant 0 : index
    %46 = vector.load %arg2[%45, %c0_14, %c0_15] : memref<8x2x96xbf16, #tpu.memory_space<vmem>>, vector<1x2x96xbf16>
    %47 = vector.shape_cast %46 : vector<1x2x96xbf16> to vector<2x96xbf16>
    %48 = arith.extf %47 : vector<2x96xbf16> to vector<2x96xf32>
    %49 = arith.truncf %40 : vector<2x32xf32> to vector<2x32xbf16>
    %cst_16 = arith.constant dense<0.000000e+00> : vector<2x96xf32>
    %50 = tpu.matmul %49, %3, %cst_16 {dimension_numbers = #tpu.dot_dimension_numbers<[1], [0], [0], [1], [0, 0, 1, 1], [], []>} : vector<2x32xbf16>, vector<32x96xbf16>, vector<2x96xf32> -> vector<2x96xf32>
    %51 = vector.extract_strided_slice %48 {offsets = [0, 0], sizes = [2, 32], strides = [1, 1]} : vector<2x96xf32> to vector<2x32xf32>
    %52 = vector.extract_strided_slice %50 {offsets = [0, 0], sizes = [2, 32], strides = [1, 1]} : vector<2x96xf32> to vector<2x32xf32>
    %53 = arith.addf %51, %52 : vector<2x32xf32>
    %54 = arith.negf %53 : vector<2x32xf32>
    %55 = math.exp %54 : vector<2x32xf32>
    %cst_17 = arith.constant 1.000000e+00 : f32
    %56 = vector.broadcast %cst_17 : f32 to vector<2x32xf32>
    %57 = arith.addf %56, %55 : vector<2x32xf32>
    %58 = arith.divf %56, %57 : vector<2x32xf32>
    %59 = vector.extract_strided_slice %48 {offsets = [0, 32], sizes = [2, 32], strides = [1, 1]} : vector<2x96xf32> to vector<2x32xf32>
    %60 = vector.extract_strided_slice %50 {offsets = [0, 32], sizes = [2, 32], strides = [1, 1]} : vector<2x96xf32> to vector<2x32xf32>
    %61 = arith.addf %59, %60 : vector<2x32xf32>
    %62 = arith.negf %61 : vector<2x32xf32>
    %63 = math.exp %62 : vector<2x32xf32>
    %cst_18 = arith.constant 1.000000e+00 : f32
    %64 = vector.broadcast %cst_18 : f32 to vector<2x32xf32>
    %65 = arith.addf %64, %63 : vector<2x32xf32>
    %66 = arith.divf %64, %65 : vector<2x32xf32>
    %67 = vector.extract_strided_slice %48 {offsets = [0, 64], sizes = [2, 32], strides = [1, 1]} : vector<2x96xf32> to vector<2x32xf32>
    %68 = vector.extract_strided_slice %50 {offsets = [0, 64], sizes = [2, 32], strides = [1, 1]} : vector<2x96xf32> to vector<2x32xf32>
    %69 = arith.addf %68, %6 : vector<2x32xf32>
    %70 = arith.mulf %58, %69 : vector<2x32xf32>
    %71 = arith.addf %67, %70 : vector<2x32xf32>
    %72 = math.tanh %71 : vector<2x32xf32>
    %cst_19 = arith.constant 1.000000e+00 : f32
    %73 = vector.broadcast %cst_19 : f32 to vector<2x32xf32>
    %74 = arith.subf %73, %66 : vector<2x32xf32>
    %75 = arith.mulf %74, %72 : vector<2x32xf32>
    %76 = arith.mulf %66, %40 : vector<2x32xf32>
    %77 = arith.addf %75, %76 : vector<2x32xf32>
    %78 = arith.index_cast %c1_i32 : i32 to index
    %c0_20 = arith.constant 0 : index
    %c0_21 = arith.constant 0 : index
    %79 = vector.load %arg5[%78, %c0_20, %c0_21] : memref<8x2x32xf32, #tpu.memory_space<vmem>>, vector<1x2x32xf32>
    %80 = vector.shape_cast %79 : vector<1x2x32xf32> to vector<2x32xf32>
    %81 = vector.shape_cast %77 : vector<2x32xf32> to vector<1x2x32xf32>
    tpu.vector_store %arg5[%78, %c0_20, %c0_21], %81 {strides = array<i32>} : memref<8x2x32xf32, #tpu.memory_space<vmem>>, vector<1x2x32xf32>,
    %c2_i32 = arith.constant 2 : i32
    %82 = arith.index_cast %c2_i32 : i32 to index
    %c0_22 = arith.constant 0 : index
    %c0_23 = arith.constant 0 : index
    %83 = vector.load %arg2[%82, %c0_22, %c0_23] : memref<8x2x96xbf16, #tpu.memory_space<vmem>>, vector<1x2x96xbf16>
    %84 = vector.shape_cast %83 : vector<1x2x96xbf16> to vector<2x96xbf16>
    %85 = arith.extf %84 : vector<2x96xbf16> to vector<2x96xf32>
    %86 = arith.truncf %77 : vector<2x32xf32> to vector<2x32xbf16>
    %cst_24 = arith.constant dense<0.000000e+00> : vector<2x96xf32>
    %87 = tpu.matmul %86, %3, %cst_24 {dimension_numbers = #tpu.dot_dimension_numbers<[1], [0], [0], [1], [0, 0, 1, 1], [], []>} : vector<2x32xbf16>, vector<32x96xbf16>, vector<2x96xf32> -> vector<2x96xf32>
    %88 = vector.extract_strided_slice %85 {offsets = [0, 0], sizes = [2, 32], strides = [1, 1]} : vector<2x96xf32> to vector<2x32xf32>
    %89 = vector.extract_strided_slice %87 {offsets = [0, 0], sizes = [2, 32], strides = [1, 1]} : vector<2x96xf32> to vector<2x32xf32>
    %90 = arith.addf %88, %89 : vector<2x32xf32>
    %91 = arith.negf %90 : vector<2x32xf32>
    %92 = math.exp %91 : vector<2x32xf32>
    %cst_25 = arith.constant 1.000000e+00 : f32
    %93 = vector.broadcast %cst_25 : f32 to vector<2x32xf32>
    %94 = arith.addf %93, %92 : vector<2x32xf32>
    %95 = arith.divf %93, %94 : vector<2x32xf32>
    %96 = vector.extract_strided_slice %85 {offsets = [0, 32], sizes = [2, 32], strides = [1, 1]} : vector<2x96xf32> to vector<2x32xf32>
    %97 = vector.extract_strided_slice %87 {offsets = [0, 32], sizes = [2, 32], strides = [1, 1]} : vector<2x96xf32> to vector<2x32xf32>
    %98 = arith.addf %96, %97 : vector<2x32xf32>
    %99 = arith.negf %98 : vector<2x32xf32>
    %100 = math.exp %99 : vector<2x32xf32>
    %cst_26 = arith.constant 1.000000e+00 : f32
    %101 = vector.broadcast %cst_26 : f32 to vector<2x32xf32>
    %102 = arith.addf %101, %100 : vector<2x32xf32>
    %103 = arith.divf %101, %102 : vector<2x32xf32>
    %104 = vector.extract_strided_slice %85 {offsets = [0, 64], sizes = [2, 32], strides = [1, 1]} : vector<2x96xf32> to vector<2x32xf32>
    %105 = vector.extract_strided_slice %87 {offsets = [0, 64], sizes = [2, 32], strides = [1, 1]} : vector<2x96xf32> to vector<2x32xf32>
    %106 = arith.addf %105, %6 : vector<2x32xf32>
    %107 = arith.mulf %95, %106 : vector<2x32xf32>
    %108 = arith.addf %104, %107 : vector<2x32xf32>
    %109 = math.tanh %108 : vector<2x32xf32>
    %cst_27 = arith.constant 1.000000e+00 : f32
    %110 = vector.broadcast %cst_27 : f32 to vector<2x32xf32>
    %111 = arith.subf %110, %103 : vector<2x32xf32>
    %112 = arith.mulf %111, %109 : vector<2x32xf32>
    %113 = arith.mulf %103, %77 : vector<2x32xf32>
    %114 = arith.addf %112, %113 : vector<2x32xf32>
    %115 = arith.index_cast %c2_i32 : i32 to index
    %c0_28 = arith.constant 0 : index
    %c0_29 = arith.constant 0 : index
    %116 = vector.load %arg5[%115, %c0_28, %c0_29] : memref<8x2x32xf32, #tpu.memory_space<vmem>>, vector<1x2x32xf32>
    %117 = vector.shape_cast %116 : vector<1x2x32xf32> to vector<2x32xf32>
    %118 = vector.shape_cast %114 : vector<2x32xf32> to vector<1x2x32xf32>
    tpu.vector_store %arg5[%115, %c0_28, %c0_29], %118 {strides = array<i32>} : memref<8x2x32xf32, #tpu.memory_space<vmem>>, vector<1x2x32xf32>,
    %c3_i32 = arith.constant 3 : i32
    %119 = arith.index_cast %c3_i32 : i32 to index
    %c0_30 = arith.constant 0 : index
    %c0_31 = arith.constant 0 : index
    %120 = vector.load %arg2[%119, %c0_30, %c0_31] : memref<8x2x96xbf16, #tpu.memory_space<vmem>>, vector<1x2x96xbf16>
    %121 = vector.shape_cast %120 : vector<1x2x96xbf16> to vector<2x96xbf16>
    %122 = arith.extf %121 : vector<2x96xbf16> to vector<2x96xf32>
    %123 = arith.truncf %114 : vector<2x32xf32> to vector<2x32xbf16>
    %cst_32 = arith.constant dense<0.000000e+00> : vector<2x96xf32>
    %124 = tpu.matmul %123, %3, %cst_32 {dimension_numbers = #tpu.dot_dimension_numbers<[1], [0], [0], [1], [0, 0, 1, 1], [], []>} : vector<2x32xbf16>, vector<32x96xbf16>, vector<2x96xf32> -> vector<2x96xf32>
    %125 = vector.extract_strided_slice %122 {offsets = [0, 0], sizes = [2, 32], strides = [1, 1]} : vector<2x96xf32> to vector<2x32xf32>
    %126 = vector.extract_strided_slice %124 {offsets = [0, 0], sizes = [2, 32], strides = [1, 1]} : vector<2x96xf32> to vector<2x32xf32>
    %127 = arith.addf %125, %126 : vector<2x32xf32>
    %128 = arith.negf %127 : vector<2x32xf32>
    %129 = math.exp %128 : vector<2x32xf32>
    %cst_33 = arith.constant 1.000000e+00 : f32
    %130 = vector.broadcast %cst_33 : f32 to vector<2x32xf32>
    %131 = arith.addf %130, %129 : vector<2x32xf32>
    %132 = arith.divf %130, %131 : vector<2x32xf32>
    %133 = vector.extract_strided_slice %122 {offsets = [0, 32], sizes = [2, 32], strides = [1, 1]} : vector<2x96xf32> to vector<2x32xf32>
    %134 = vector.extract_strided_slice %124 {offsets = [0, 32], sizes = [2, 32], strides = [1, 1]} : vector<2x96xf32> to vector<2x32xf32>
    %135 = arith.addf %133, %134 : vector<2x32xf32>
    %136 = arith.negf %135 : vector<2x32xf32>
    %137 = math.exp %136 : vector<2x32xf32>
    %cst_34 = arith.constant 1.000000e+00 : f32
    %138 = vector.broadcast %cst_34 : f32 to vector<2x32xf32>
    %139 = arith.addf %138, %137 : vector<2x32xf32>
    %140 = arith.divf %138, %139 : vector<2x32xf32>
    %141 = vector.extract_strided_slice %122 {offsets = [0, 64], sizes = [2, 32], strides = [1, 1]} : vector<2x96xf32> to vector<2x32xf32>
    %142 = vector.extract_strided_slice %124 {offsets = [0, 64], sizes = [2, 32], strides = [1, 1]} : vector<2x96xf32> to vector<2x32xf32>
    %143 = arith.addf %142, %6 : vector<2x32xf32>
    %144 = arith.mulf %132, %143 : vector<2x32xf32>
    %145 = arith.addf %141, %144 : vector<2x32xf32>
    %146 = math.tanh %145 : vector<2x32xf32>
    %cst_35 = arith.constant 1.000000e+00 : f32
    %147 = vector.broadcast %cst_35 : f32 to vector<2x32xf32>
    %148 = arith.subf %147, %140 : vector<2x32xf32>
    %149 = arith.mulf %148, %146 : vector<2x32xf32>
    %150 = arith.mulf %140, %114 : vector<2x32xf32>
    %151 = arith.addf %149, %150 : vector<2x32xf32>
    %152 = arith.index_cast %c3_i32 : i32 to index
    %c0_36 = arith.constant 0 : index
    %c0_37 = arith.constant 0 : index
    %153 = vector.load %arg5[%152, %c0_36, %c0_37] : memref<8x2x32xf32, #tpu.memory_space<vmem>>, vector<1x2x32xf32>
    %154 = vector.shape_cast %153 : vector<1x2x32xf32> to vector<2x32xf32>
    %155 = vector.shape_cast %151 : vector<2x32xf32> to vector<1x2x32xf32>
    tpu.vector_store %arg5[%152, %c0_36, %c0_37], %155 {strides = array<i32>} : memref<8x2x32xf32, #tpu.memory_space<vmem>>, vector<1x2x32xf32>,
    %c4_i32 = arith.constant 4 : i32
    %156 = arith.index_cast %c4_i32 : i32 to index
    %c0_38 = arith.constant 0 : index
    %c0_39 = arith.constant 0 : index
    %157 = vector.load %arg2[%156, %c0_38, %c0_39] : memref<8x2x96xbf16, #tpu.memory_space<vmem>>, vector<1x2x96xbf16>
    %158 = vector.shape_cast %157 : vector<1x2x96xbf16> to vector<2x96xbf16>
    %159 = arith.extf %158 : vector<2x96xbf16> to vector<2x96xf32>
    %160 = arith.truncf %151 : vector<2x32xf32> to vector<2x32xbf16>
    %cst_40 = arith.constant dense<0.000000e+00> : vector<2x96xf32>
    %161 = tpu.matmul %160, %3, %cst_40 {dimension_numbers = #tpu.dot_dimension_numbers<[1], [0], [0], [1], [0, 0, 1, 1], [], []>} : vector<2x32xbf16>, vector<32x96xbf16>, vector<2x96xf32> -> vector<2x96xf32>
    %162 = vector.extract_strided_slice %159 {offsets = [0, 0], sizes = [2, 32], strides = [1, 1]} : vector<2x96xf32> to vector<2x32xf32>
    %163 = vector.extract_strided_slice %161 {offsets = [0, 0], sizes = [2, 32], strides = [1, 1]} : vector<2x96xf32> to vector<2x32xf32>
    %164 = arith.addf %162, %163 : vector<2x32xf32>
    %165 = arith.negf %164 : vector<2x32xf32>
    %166 = math.exp %165 : vector<2x32xf32>
    %cst_41 = arith.constant 1.000000e+00 : f32
    %167 = vector.broadcast %cst_41 : f32 to vector<2x32xf32>
    %168 = arith.addf %167, %166 : vector<2x32xf32>
    %169 = arith.divf %167, %168 : vector<2x32xf32>
    %170 = vector.extract_strided_slice %159 {offsets = [0, 32], sizes = [2, 32], strides = [1, 1]} : vector<2x96xf32> to vector<2x32xf32>
    %171 = vector.extract_strided_slice %161 {offsets = [0, 32], sizes = [2, 32], strides = [1, 1]} : vector<2x96xf32> to vector<2x32xf32>
    %172 = arith.addf %170, %171 : vector<2x32xf32>
    %173 = arith.negf %172 : vector<2x32xf32>
    %174 = math.exp %173 : vector<2x32xf32>
    %cst_42 = arith.constant 1.000000e+00 : f32
    %175 = vector.broadcast %cst_42 : f32 to vector<2x32xf32>
    %176 = arith.addf %175, %174 : vector<2x32xf32>
    %177 = arith.divf %175, %176 : vector<2x32xf32>
    %178 = vector.extract_strided_slice %159 {offsets = [0, 64], sizes = [2, 32], strides = [1, 1]} : vector<2x96xf32> to vector<2x32xf32>
    %179 = vector.extract_strided_slice %161 {offsets = [0, 64], sizes = [2, 32], strides = [1, 1]} : vector<2x96xf32> to vector<2x32xf32>
    %180 = arith.addf %179, %6 : vector<2x32xf32>
    %181 = arith.mulf %169, %180 : vector<2x32xf32>
    %182 = arith.addf %178, %181 : vector<2x32xf32>
    %183 = math.tanh %182 : vector<2x32xf32>
    %cst_43 = arith.constant 1.000000e+00 : f32
    %184 = vector.broadcast %cst_43 : f32 to vector<2x32xf32>
    %185 = arith.subf %184, %177 : vector<2x32xf32>
    %186 = arith.mulf %185, %183 : vector<2x32xf32>
    %187 = arith.mulf %177, %151 : vector<2x32xf32>
    %188 = arith.addf %186, %187 : vector<2x32xf32>
    %189 = arith.index_cast %c4_i32 : i32 to index
    %c0_44 = arith.constant 0 : index
    %c0_45 = arith.constant 0 : index
    %190 = vector.load %arg5[%189, %c0_44, %c0_45] : memref<8x2x32xf32, #tpu.memory_space<vmem>>, vector<1x2x32xf32>
    %191 = vector.shape_cast %190 : vector<1x2x32xf32> to vector<2x32xf32>
    %192 = vector.shape_cast %188 : vector<2x32xf32> to vector<1x2x32xf32>
    tpu.vector_store %arg5[%189, %c0_44, %c0_45], %192 {strides = array<i32>} : memref<8x2x32xf32, #tpu.memory_space<vmem>>, vector<1x2x32xf32>,
    %c5_i32 = arith.constant 5 : i32
    %193 = arith.index_cast %c5_i32 : i32 to index
    %c0_46 = arith.constant 0 : index
    %c0_47 = arith.constant 0 : index
    %194 = vector.load %arg2[%193, %c0_46, %c0_47] : memref<8x2x96xbf16, #tpu.memory_space<vmem>>, vector<1x2x96xbf16>
    %195 = vector.shape_cast %194 : vector<1x2x96xbf16> to vector<2x96xbf16>
    %196 = arith.extf %195 : vector<2x96xbf16> to vector<2x96xf32>
    %197 = arith.truncf %188 : vector<2x32xf32> to vector<2x32xbf16>
    %cst_48 = arith.constant dense<0.000000e+00> : vector<2x96xf32>
    %198 = tpu.matmul %197, %3, %cst_48 {dimension_numbers = #tpu.dot_dimension_numbers<[1], [0], [0], [1], [0, 0, 1, 1], [], []>} : vector<2x32xbf16>, vector<32x96xbf16>, vector<2x96xf32> -> vector<2x96xf32>
    %199 = vector.extract_strided_slice %196 {offsets = [0, 0], sizes = [2, 32], strides = [1, 1]} : vector<2x96xf32> to vector<2x32xf32>
    %200 = vector.extract_strided_slice %198 {offsets = [0, 0], sizes = [2, 32], strides = [1, 1]} : vector<2x96xf32> to vector<2x32xf32>
    %201 = arith.addf %199, %200 : vector<2x32xf32>
    %202 = arith.negf %201 : vector<2x32xf32>
    %203 = math.exp %202 : vector<2x32xf32>
    %cst_49 = arith.constant 1.000000e+00 : f32
    %204 = vector.broadcast %cst_49 : f32 to vector<2x32xf32>
    %205 = arith.addf %204, %203 : vector<2x32xf32>
    %206 = arith.divf %204, %205 : vector<2x32xf32>
    %207 = vector.extract_strided_slice %196 {offsets = [0, 32], sizes = [2, 32], strides = [1, 1]} : vector<2x96xf32> to vector<2x32xf32>
    %208 = vector.extract_strided_slice %198 {offsets = [0, 32], sizes = [2, 32], strides = [1, 1]} : vector<2x96xf32> to vector<2x32xf32>
    %209 = arith.addf %207, %208 : vector<2x32xf32>
    %210 = arith.negf %209 : vector<2x32xf32>
    %211 = math.exp %210 : vector<2x32xf32>
    %cst_50 = arith.constant 1.000000e+00 : f32
    %212 = vector.broadcast %cst_50 : f32 to vector<2x32xf32>
    %213 = arith.addf %212, %211 : vector<2x32xf32>
    %214 = arith.divf %212, %213 : vector<2x32xf32>
    %215 = vector.extract_strided_slice %196 {offsets = [0, 64], sizes = [2, 32], strides = [1, 1]} : vector<2x96xf32> to vector<2x32xf32>
    %216 = vector.extract_strided_slice %198 {offsets = [0, 64], sizes = [2, 32], strides = [1, 1]} : vector<2x96xf32> to vector<2x32xf32>
    %217 = arith.addf %216, %6 : vector<2x32xf32>
    %218 = arith.mulf %206, %217 : vector<2x32xf32>
    %219 = arith.addf %215, %218 : vector<2x32xf32>
    %220 = math.tanh %219 : vector<2x32xf32>
    %cst_51 = arith.constant 1.000000e+00 : f32
    %221 = vector.broadcast %cst_51 : f32 to vector<2x32xf32>
    %222 = arith.subf %221, %214 : vector<2x32xf32>
    %223 = arith.mulf %222, %220 : vector<2x32xf32>
    %224 = arith.mulf %214, %188 : vector<2x32xf32>
    %225 = arith.addf %223, %224 : vector<2x32xf32>
    %226 = arith.index_cast %c5_i32 : i32 to index
    %c0_52 = arith.constant 0 : index
    %c0_53 = arith.constant 0 : index
    %227 = vector.load %arg5[%226, %c0_52, %c0_53] : memref<8x2x32xf32, #tpu.memory_space<vmem>>, vector<1x2x32xf32>
    %228 = vector.shape_cast %227 : vector<1x2x32xf32> to vector<2x32xf32>
    %229 = vector.shape_cast %225 : vector<2x32xf32> to vector<1x2x32xf32>
    tpu.vector_store %arg5[%226, %c0_52, %c0_53], %229 {strides = array<i32>} : memref<8x2x32xf32, #tpu.memory_space<vmem>>, vector<1x2x32xf32>,
    %c6_i32 = arith.constant 6 : i32
    %230 = arith.index_cast %c6_i32 : i32 to index
    %c0_54 = arith.constant 0 : index
    %c0_55 = arith.constant 0 : index
    %231 = vector.load %arg2[%230, %c0_54, %c0_55] : memref<8x2x96xbf16, #tpu.memory_space<vmem>>, vector<1x2x96xbf16>
    %232 = vector.shape_cast %231 : vector<1x2x96xbf16> to vector<2x96xbf16>
    %233 = arith.extf %232 : vector<2x96xbf16> to vector<2x96xf32>
    %234 = arith.truncf %225 : vector<2x32xf32> to vector<2x32xbf16>
    %cst_56 = arith.constant dense<0.000000e+00> : vector<2x96xf32>
    %235 = tpu.matmul %234, %3, %cst_56 {dimension_numbers = #tpu.dot_dimension_numbers<[1], [0], [0], [1], [0, 0, 1, 1], [], []>} : vector<2x32xbf16>, vector<32x96xbf16>, vector<2x96xf32> -> vector<2x96xf32>
    %236 = vector.extract_strided_slice %233 {offsets = [0, 0], sizes = [2, 32], strides = [1, 1]} : vector<2x96xf32> to vector<2x32xf32>
    %237 = vector.extract_strided_slice %235 {offsets = [0, 0], sizes = [2, 32], strides = [1, 1]} : vector<2x96xf32> to vector<2x32xf32>
    %238 = arith.addf %236, %237 : vector<2x32xf32>
    %239 = arith.negf %238 : vector<2x32xf32>
    %240 = math.exp %239 : vector<2x32xf32>
    %cst_57 = arith.constant 1.000000e+00 : f32
    %241 = vector.broadcast %cst_57 : f32 to vector<2x32xf32>
    %242 = arith.addf %241, %240 : vector<2x32xf32>
    %243 = arith.divf %241, %242 : vector<2x32xf32>
    %244 = vector.extract_strided_slice %233 {offsets = [0, 32], sizes = [2, 32], strides = [1, 1]} : vector<2x96xf32> to vector<2x32xf32>
    %245 = vector.extract_strided_slice %235 {offsets = [0, 32], sizes = [2, 32], strides = [1, 1]} : vector<2x96xf32> to vector<2x32xf32>
    %246 = arith.addf %244, %245 : vector<2x32xf32>
    %247 = arith.negf %246 : vector<2x32xf32>
    %248 = math.exp %247 : vector<2x32xf32>
    %cst_58 = arith.constant 1.000000e+00 : f32
    %249 = vector.broadcast %cst_58 : f32 to vector<2x32xf32>
    %250 = arith.addf %249, %248 : vector<2x32xf32>
    %251 = arith.divf %249, %250 : vector<2x32xf32>
    %252 = vector.extract_strided_slice %233 {offsets = [0, 64], sizes = [2, 32], strides = [1, 1]} : vector<2x96xf32> to vector<2x32xf32>
    %253 = vector.extract_strided_slice %235 {offsets = [0, 64], sizes = [2, 32], strides = [1, 1]} : vector<2x96xf32> to vector<2x32xf32>
    %254 = arith.addf %253, %6 : vector<2x32xf32>
    %255 = arith.mulf %243, %254 : vector<2x32xf32>
    %256 = arith.addf %252, %255 : vector<2x32xf32>
    %257 = math.tanh %256 : vector<2x32xf32>
    %cst_59 = arith.constant 1.000000e+00 : f32
    %258 = vector.broadcast %cst_59 : f32 to vector<2x32xf32>
    %259 = arith.subf %258, %251 : vector<2x32xf32>
    %260 = arith.mulf %259, %257 : vector<2x32xf32>
    %261 = arith.mulf %251, %225 : vector<2x32xf32>
    %262 = arith.addf %260, %261 : vector<2x32xf32>
    %263 = arith.index_cast %c6_i32 : i32 to index
    %c0_60 = arith.constant 0 : index
    %c0_61 = arith.constant 0 : index
    %264 = vector.load %arg5[%263, %c0_60, %c0_61] : memref<8x2x32xf32, #tpu.memory_space<vmem>>, vector<1x2x32xf32>
    %265 = vector.shape_cast %264 : vector<1x2x32xf32> to vector<2x32xf32>
    %266 = vector.shape_cast %262 : vector<2x32xf32> to vector<1x2x32xf32>
    tpu.vector_store %arg5[%263, %c0_60, %c0_61], %266 {strides = array<i32>} : memref<8x2x32xf32, #tpu.memory_space<vmem>>, vector<1x2x32xf32>,
    %c7_i32 = arith.constant 7 : i32
    %267 = arith.index_cast %c7_i32 : i32 to index
    %c0_62 = arith.constant 0 : index
    %c0_63 = arith.constant 0 : index
    %268 = vector.load %arg2[%267, %c0_62, %c0_63] : memref<8x2x96xbf16, #tpu.memory_space<vmem>>, vector<1x2x96xbf16>
    %269 = vector.shape_cast %268 : vector<1x2x96xbf16> to vector<2x96xbf16>
    %270 = arith.extf %269 : vector<2x96xbf16> to vector<2x96xf32>
    %271 = arith.truncf %262 : vector<2x32xf32> to vector<2x32xbf16>
    %cst_64 = arith.constant dense<0.000000e+00> : vector<2x96xf32>
    %272 = tpu.matmul %271, %3, %cst_64 {dimension_numbers = #tpu.dot_dimension_numbers<[1], [0], [0], [1], [0, 0, 1, 1], [], []>} : vector<2x32xbf16>, vector<32x96xbf16>, vector<2x96xf32> -> vector<2x96xf32>
    %273 = vector.extract_strided_slice %270 {offsets = [0, 0], sizes = [2, 32], strides = [1, 1]} : vector<2x96xf32> to vector<2x32xf32>
    %274 = vector.extract_strided_slice %272 {offsets = [0, 0], sizes = [2, 32], strides = [1, 1]} : vector<2x96xf32> to vector<2x32xf32>
    %275 = arith.addf %273, %274 : vector<2x32xf32>
    %276 = arith.negf %275 : vector<2x32xf32>
    %277 = math.exp %276 : vector<2x32xf32>
    %cst_65 = arith.constant 1.000000e+00 : f32
    %278 = vector.broadcast %cst_65 : f32 to vector<2x32xf32>
    %279 = arith.addf %278, %277 : vector<2x32xf32>
    %280 = arith.divf %278, %279 : vector<2x32xf32>
    %281 = vector.extract_strided_slice %270 {offsets = [0, 32], sizes = [2, 32], strides = [1, 1]} : vector<2x96xf32> to vector<2x32xf32>
    %282 = vector.extract_strided_slice %272 {offsets = [0, 32], sizes = [2, 32], strides = [1, 1]} : vector<2x96xf32> to vector<2x32xf32>
    %283 = arith.addf %281, %282 : vector<2x32xf32>
    %284 = arith.negf %283 : vector<2x32xf32>
    %285 = math.exp %284 : vector<2x32xf32>
    %cst_66 = arith.constant 1.000000e+00 : f32
    %286 = vector.broadcast %cst_66 : f32 to vector<2x32xf32>
    %287 = arith.addf %286, %285 : vector<2x32xf32>
    %288 = arith.divf %286, %287 : vector<2x32xf32>
    %289 = vector.extract_strided_slice %270 {offsets = [0, 64], sizes = [2, 32], strides = [1, 1]} : vector<2x96xf32> to vector<2x32xf32>
    %290 = vector.extract_strided_slice %272 {offsets = [0, 64], sizes = [2, 32], strides = [1, 1]} : vector<2x96xf32> to vector<2x32xf32>
    %291 = arith.addf %290, %6 : vector<2x32xf32>
    %292 = arith.mulf %280, %291 : vector<2x32xf32>
    %293 = arith.addf %289, %292 : vector<2x32xf32>
    %294 = math.tanh %293 : vector<2x32xf32>
    %cst_67 = arith.constant 1.000000e+00 : f32
    %295 = vector.broadcast %cst_67 : f32 to vector<2x32xf32>
    %296 = arith.subf %295, %288 : vector<2x32xf32>
    %297 = arith.mulf %296, %294 : vector<2x32xf32>
    %298 = arith.mulf %288, %262 : vector<2x32xf32>
    %299 = arith.addf %297, %298 : vector<2x32xf32>
    %300 = arith.index_cast %c7_i32 : i32 to index
    %c0_68 = arith.constant 0 : index
    %c0_69 = arith.constant 0 : index
    %301 = vector.load %arg5[%300, %c0_68, %c0_69] : memref<8x2x32xf32, #tpu.memory_space<vmem>>, vector<1x2x32xf32>
    %302 = vector.shape_cast %301 : vector<1x2x32xf32> to vector<2x32xf32>
    %303 = vector.shape_cast %299 : vector<2x32xf32> to vector<1x2x32xf32>
    tpu.vector_store %arg5[%300, %c0_68, %c0_69], %303 {strides = array<i32>} : memref<8x2x32xf32, #tpu.memory_space<vmem>>, vector<1x2x32xf32>,
    %c8_i32 = arith.constant 8 : i32
    %c0_70 = arith.constant 0 : index
    %c0_71 = arith.constant 0 : index
    %304 = vector.load %arg6[%c0_70, %c0_71] : memref<2x32xf32, #tpu.memory_space<vmem>>, vector<2x32xf32>
    tpu.vector_store %arg6[%c0_70, %c0_71], %299 {strides = array<i32>} : memref<2x32xf32, #tpu.memory_space<vmem>>, vector<2x32xf32>,
    return
  }
  func.func @transform_0(%arg0: i32, %arg1: i32) -> (i32, i32, i32) {
    %c0_i32 = arith.constant 0 : i32
    %c0_i32_0 = arith.constant 0 : i32
    return %arg1, %arg0, %c0_i32 : i32, i32, i32
  }
  func.func @transform_1(%arg0: i32, %arg1: i32) -> (i32, i32) {
    %c0_i32 = arith.constant 0 : i32
    %c0_i32_0 = arith.constant 0 : i32
    %c0_i32_1 = arith.constant 0 : i32
    return %c0_i32, %c0_i32_0 : i32, i32
  }
  func.func @transform_2(%arg0: i32, %arg1: i32) -> (i32, i32) {
    %c0_i32 = arith.constant 0 : i32
    %c0_i32_0 = arith.constant 0 : i32
    %c0_i32_1 = arith.constant 0 : i32
    return %c0_i32, %c0_i32_0 : i32, i32
  }
  func.func @transform_3(%arg0: i32, %arg1: i32) -> (i32, i32, i32) {
    %c0_i32 = arith.constant 0 : i32
    %c0_i32_0 = arith.constant 0 : i32
    return %arg1, %arg0, %c0_i32 : i32, i32, i32
  }
}

</mosaic_0001>

<bundles_post_ra>
// kernel: tpu_custom_call.1
= control target key start
LH: loop header
LB: loop body
LE: loop exit
PB: predicated region body
PF: predicated region fallthrough
CT: control target
= control target key end

     0   :  { %8 = vsyncpa [#allocation4], 0  ;;  %s1341_s0 = inlined_call_operand.hbm [shape: bf16[8,2,96], index: 0, kind: input, shape index: {}]   ;;  %s1342_s1 = inlined_call_operand.hbm [shape: bf16[32,96], index: 1, kind: input, shape index: {}]   ;;  %s1343_s2 = inlined_call_operand.vmem [shape: f32[1,32], index: 2, kind: input, shape index: {}]   ;;  %s1344_s3 = inlined_call_operand.hbm [shape: f32[8,2,32], index: 3, kind: output, shape index: {}]  }
   0x1   :  { %9 = vsyncpa [#allocation7], 0 }
   0x2   :  { %10 = vsyncpa [#allocation5], 0  ;;  %s1115_s12 = smov [#allocation3]  }
   0x3   :  { %s16_s13 = sshll.u32 %s1115_s12, 4  ;;  %s17_s13 = int_to_ptr.vmem [resolvable:$true] %s16_s13 }
   0x4   :  { %s1057_s14 = scalar_lea.vmem %s17_s13, 128  ;;  %p1062_p1 = scmp.lt.s32.totalorder %s17_s13, %s17_s13 }
   0x5   :  { %p1058_p0 = scmp.ne.s32.totalorder %s17_s13, %s1057_s14  ;;  %p1063_p2 = scmp.lt.s32.totalorder %s1057_s14, %s1057_s14 }
   0x7   :  { %p1064_p3 = por %p1063_p2, %p1062_p1 }
   0x9   :  { %p1065_p4 = pnand %p1064_p3, %p1058_p0 }
   0xb   :  { %1068 = shalt.err (!%p1065_p4)
}
   0xc   :  { %s1116_s15 = smov 16   ;;  %s1117_s16 = smov 1  }
   0xd   :  { %22 = dma.hbm_to_vmem [thread:$0]  %s1341_s0, 128, %s17_s13, [#allocation4], %s1116_s15, %s1116_s15, %s1117_s16  }
   0xe   :  { %s1118_s19 = smov [#allocation6]  }
   0xf   :  { %s28_s20 = sshll.u32 %s1118_s19, 4  ;;  %s29_s20 = int_to_ptr.vmem [resolvable:$true] %s28_s20 }
  0x10   :  { %s1077_s21 = scalar_lea.vmem %s29_s20, 256  ;;  %p1082_p6 = scmp.lt.s32.totalorder %s29_s20, %s29_s20 }
  0x11   :  { %p1078_p5 = scmp.ne.s32.totalorder %s29_s20, %s1077_s21  ;;  %p1083_p7 = scmp.lt.s32.totalorder %s1077_s21, %s1077_s21 }
  0x13   :  { %p1084_p8 = por %p1083_p7, %p1082_p6 }
  0x15   :  { %p1085_p9 = pnand %p1084_p8, %p1078_p5 }
  0x17   :  { %1088 = shalt.err (!%p1085_p9)
}
  0x18   :  { %s1119_s22 = smov 64   ;;  %s1120_s23 = smov 4  }
  0x19   :  { %34 = dma.hbm_to_vmem [thread:$0]  %s1342_s1, 256, %s29_s20, [#allocation7], %s1119_s22, %s1119_s22, %s1120_s23  }
  0x1a   :  { %1109 = dma.done.wait [#allocation4], 128  }
  0x1b   :  { %1110 = vsyncadd [#allocation4], 4294967168 }
  0x1c   :  { %1111 = dma.done.wait [#allocation7], 256  }
  0x1d   :  { %1112 = vsyncadd [#allocation7], 4294967040  ;;  %vm48_vm0 = vcmask 254976   ;;  %v1121_v0 = vmov 0.0   ;;  %vm1122_vm1 = vmmov 0   ;;  %v1164_v1 = vld [vmem:[#allocation6 + $0x8] sm:$0xff]   ;;  %v135_v8 = vlaneseq }
  0x1e   :  { %922 = vmatprep.subr.bf16.mxu0 %v1121_v0  ;;  %926 = vmatprep.mubr.msk.bf16.mxu0 %vm1122_vm1, %v1121_v0  ;;  %49 = vst.msk [vmem:[#allocation2] sm:$0x3] %vm48_vm0, %v1121_v0  ;;  %v1167_v2 = vld [vmem:[#allocation6] sm:$0xff]   ;;  %v879_v4 = vld [vmem:[%s1343_s2] ss:$0 sm:$0xff]  ;;  %vm76_vm2 = vcmask 261120  }
  0x1f   :  { %930 = vmatprep.subr.bf16.mxu1 %v1121_v0  ;;  %934 = vmatprep.mubr.msk.bf16.mxu1 %vm1122_vm1, %v1121_v0  ;;  %v1123_v6 = vmov 1983009808   ;;  %v136_v10 = vshrl.u32 %v135_v8, 7  ;;  %s1124_s2 = smov 32   ;;  %v61_v20 = vld [vmem:[#allocation3] sm:$0x1] }
  0x20   :  { %923 = vmatpush3.bf16.msra.mxu0 %v1164_v1  ;;  %931 = vmatpush3.bf16.msra.mxu1 %v1164_v1  ;;  %v133_v7 = vunpack.c.l.s4 %v1123_v6  ;;  %v62_v21 = vunpack.c.l.bf16 %v61_v20  ;;  %s1125_s26 = smov 96   ;;  %v182_v46 = vld [vmem:[#allocation3 + $0x1] sm:$0x1]  ;;  %s1126_s27 = smov [#allocation8]  }
  0x21   :  { %924 = vmatprep.subr.bf16.mxu0 %v1121_v0  ;;  %127 = vrot.lane.b32.xlu0 %v879_v4, %s1119_s22  ;;  %v183_v47 = vunpack.c.l.bf16 %v182_v46  ;;  %s866_s28 = sshll.u32 %s1126_s27, 4  ;;  %s867_s28 = int_to_ptr.vmem [resolvable:$true] %s866_s28 }
  0x22   :  { %932 = vmatprep.subr.bf16.mxu1 %v1121_v0  ;;  %v134_v9 = vunpack.c.0.s8 %v133_v7  ;;  %s1089_s29 = scalar_lea.vmem %s867_s28, 256  ;;  %p1094_p11 = scmp.lt.s32.totalorder %s867_s28, %s867_s28 }
  0x23   :  { %p1090_p10 = scmp.ne.s32.totalorder %s867_s28, %s1089_s29  ;;  %p1095_p12 = scmp.lt.s32.totalorder %s1089_s29, %s1089_s29 }
  0x24   :  { %925 = vmatpush3.bf16.msra.mxu0 %v1167_v2  ;;  %933 = vmatpush3.bf16.msra.mxu1 %v1167_v2  ;;  %v1189_v12 = vsub.s32 %v134_v9, %v136_v10  ;;  %v279_v10 = vld [vmem:[#allocation3 + $0x2] sm:$0x1] }
  0x25   :  { %v60_v3 = vld [vmem:[#allocation2] sm:$0x3]  ;;  %938 = vmatprep.subr.bf16.mxu0 %v1121_v0  ;;  %946 = vmatprep.subr.bf16.mxu1 %v1121_v0  ;;  %p1096_p13 = por %p1095_p12, %p1094_p11 }
  0x26   :  { %v63_v5 = vpack.c.bf16 %v60_v3, %v60_v3  ;;  %v162_v18 = vrot.slane %v60_v3, %v1189_v12 }
  0x27   :  { %p1097_p0 = pnand %p1096_p13, %p1090_p10 }
  0x28   :  { %927 = vmatmul.mubr.msk.bf16.vlgmr.msra.gmra.mxu0 %vm76_vm2, %v63_v5 }
  0x29   :  { %939 = vmatpush3.bf16.msra.mxu0 %v1164_v1  ;;  %942 = vmatprep.mubr.msk.bf16.mxu0 %vm1122_vm1, %v1121_v0 }
  0x2a   :  { %940 = vmatprep.subr.bf16.mxu0 %v1121_v0 }
  0x2d   :  { %941 = vmatpush3.bf16.msra.mxu0 %v1167_v2 }
  0x2e   :  { %954 = vmatprep.subr.bf16.mxu0 %v1121_v0 }
  0x93   :  { %v1187_v11 = vpop.permute.xlu0 %127 }
  0xe8   :  { %v114_v13 = vpop.f32.mrf.mxu0 }
  0xe9   :  { %v130_v14 = vadd.f32 %v1187_v11, %v114_v13  ;;  %v120_v22 = vadd.f32 %v114_v13, %v62_v21  ;;  %v280_v13 = vunpack.c.l.bf16 %v279_v10 }
  0xea   :  { %v928_v15 = vpop.f32.mrf.mxu0 }
  0xeb   :  { %v138_v16 = vrot.slane %v130_v14, %v1189_v12  ;;  %v883_v23 = vmul.f32 -1.442695, %v120_v22 }
  0xec   :  { %v117_v17 = vpop.f32.mrf.mxu0 }
  0xed   :  { %139 = vrot.lane.b32.xlu0 %v138_v16, %s1119_s22  ;;  %1001 = vpow2.f32 %v883_v23 }
  0xee   :  { %v929_v19 = vpop.f32.mrf.mxu0 }
  0xf1   :  { %163 = vrot.lane.b32.xlu0 %v162_v18, %s1124_s2 }
  0xfa   :  { %v1002_v24 = vpop.eup %1001 }
  0xfb   :  { %v124_v25 = vadd.f32 1.0, %v1002_v24 }
  0xfd   :  { %1003 = vrcp.f32 %v124_v25 }
 0x10a   :  { %v1004_v26 = vpop.eup %1003 }
 0x10b   :  { %v149_v33 = vsub.f32 1.0, %v1004_v26 }
 0x15f   :  { %v140_v27 = vpop.permute.xlu0 %139 }
 0x160   :  { %v142_v28 = vmul.f32 %v1004_v26, %v140_v27 }
 0x162   :  { %144 = vrot.lane.b32.xlu1 %v142_v28, %s1119_s22 }
 0x163   :  { %v164_v32 = vpop.permute.xlu0 %163 }
 0x164   :  { %v166_v35 = vmul.f32 %v1004_v26, %v164_v32 }
 0x1d4   :  { %v145_v29 = vpop.permute.xlu1 %144 }
 0x1d5   :  { %v147_v30 = vadd.f32 %v145_v29, %v62_v21 }
 0x1d7   :  { %1005 = vtanh.f32 %v147_v30 }
 0x1e4   :  { %v1006_v31 = vpop.eup %1005 }
 0x1e5   :  { %151 = vrot.lane.b32.xlu1 %v1006_v31, %s1125_s26 }
 0x257   :  { %v152_v34 = vpop.permute.xlu1 %151 }
 0x258   :  { %v154_v36 = vmul.f32 %v152_v34, %v149_v33 }
 0x25a   :  { %v1198_v37 = vadd.f32 %v166_v35, %v154_v36 }
 0x25c   :  { %v184_v38 = vpack.c.bf16 %v1198_v37, %v1198_v37 }
 0x25e   :  { %186 = vrot.lane.b32.xlu1 %v184_v38, %s1125_s26  ;;  %v376_v38 = vld [vmem:[#allocation3 + $0x3] sm:$0x1] }
 0x2d0   :  { %v187_v39 = vpop.permute.xlu1 %186 }
 0x2d1   :  { %935 = vmatmul.mubr.msk.bf16.vlgmr.msra.gmra.mxu1 %vm76_vm2, %v187_v39  ;;  %v377_v39 = vunpack.c.l.bf16 %v376_v38 }
 0x2d2   :  { %947 = vmatpush3.bf16.msra.mxu1 %v1164_v1  ;;  %950 = vmatprep.mubr.msk.bf16.mxu1 %vm1122_vm1, %v1121_v0 }
 0x2d3   :  { %948 = vmatprep.subr.bf16.mxu1 %v1121_v0 }
 0x2d6   :  { %949 = vmatpush3.bf16.msra.mxu1 %v1167_v2 }
 0x2d7   :  { %962 = vmatprep.subr.bf16.mxu1 %v1121_v0 }
 0x391   :  { %v225_v40 = vpop.f32.mrf.mxu1 }
 0x392   :  { %v238_v41 = vadd.f32 %v225_v40, %v1187_v11  ;;  %v231_v48 = vadd.f32 %v225_v40, %v183_v47 }
 0x393   :  { %v936_v42 = vpop.f32.mrf.mxu1 }
 0x394   :  { %v246_v43 = vrot.slane %v238_v41, %v1189_v12  ;;  %v885_v49 = vmul.f32 -1.442695, %v231_v48 }
 0x395   :  { %v228_v44 = vpop.f32.mrf.mxu1 }
 0x396   :  { %247 = vrot.lane.b32.xlu0 %v246_v43, %s1119_s22  ;;  %1007 = vpow2.f32 %v885_v49 }
 0x397   :  { %v937_v45 = vpop.f32.mrf.mxu1 }
 0x3a3   :  { %v1008_v50 = vpop.eup %1007 }
 0x3a4   :  { %v235_v51 = vadd.f32 1.0, %v1008_v50 }
 0x3a6   :  { %1009 = vrcp.f32 %v235_v51 }
 0x3b3   :  { %v1010_v52 = vpop.eup %1009 }
 0x3b4   :  { %v257_v58 = vsub.f32 1.0, %v1010_v52  ;;  %v263_v60 = vmul.f32 %v1010_v52, %v1198_v37 }
 0x408   :  { %v248_v53 = vpop.permute.xlu0 %247 }
 0x409   :  { %v250_v54 = vmul.f32 %v1010_v52, %v248_v53 }
 0x40b   :  { %252 = vrot.lane.b32.xlu1 %v250_v54, %s1119_s22 }
 0x47d   :  { %v253_v55 = vpop.permute.xlu1 %252 }
 0x47e   :  { %v255_v56 = vadd.f32 %v253_v55, %v183_v47 }
 0x480   :  { %1011 = vtanh.f32 %v255_v56 }
 0x48d   :  { %v1012_v57 = vpop.eup %1011 }
 0x48e   :  { %259 = vrot.lane.b32.xlu0 %v1012_v57, %s1125_s26 }
 0x500   :  { %v260_v59 = vpop.permute.xlu0 %259 }
 0x501   :  { %v262_v61 = vmul.f32 %v260_v59, %v257_v58 }
 0x503   :  { %v1216_v62 = vadd.f32 %v263_v60, %v262_v61 }
 0x505   :  { %v281_v63 = vpack.c.bf16 %v1216_v62, %v1216_v62 }
 0x507   :  { %283 = vrot.lane.b32.xlu1 %v281_v63, %s1125_s26 }
 0x579   :  { %v284_v3 = vpop.permute.xlu1 %283 }
 0x57a   :  { %943 = vmatmul.mubr.msk.bf16.vlgmr.msra.gmra.mxu0 %vm76_vm2, %v284_v3  ;;  %v473_v3 = vld [vmem:[#allocation3 + $0x4] sm:$0x1] }
 0x57b   :  { %955 = vmatpush3.bf16.msra.mxu0 %v1164_v1  ;;  %958 = vmatprep.mubr.msk.bf16.mxu0 %vm1122_vm1, %v1121_v0 }
 0x57c   :  { %956 = vmatprep.subr.bf16.mxu0 %v1121_v0 }
 0x57f   :  { %957 = vmatpush3.bf16.msra.mxu0 %v1167_v2 }
 0x580   :  { %970 = vmatprep.subr.bf16.mxu0 %v1121_v0 }
 0x63a   :  { %v322_v4 = vpop.f32.mrf.mxu0 }
 0x63b   :  { %v335_v5 = vadd.f32 %v322_v4, %v1187_v11  ;;  %v328_v14 = vadd.f32 %v322_v4, %v280_v13  ;;  %v474_v4 = vunpack.c.l.bf16 %v473_v3 }
 0x63c   :  { %v944_v6 = vpop.f32.mrf.mxu0 }
 0x63d   :  { %v343_v7 = vrot.slane %v335_v5, %v1189_v12  ;;  %v887_v15 = vmul.f32 -1.442695, %v328_v14 }
 0x63e   :  { %v325_v8 = vpop.f32.mrf.mxu0 }
 0x63f   :  { %344 = vrot.lane.b32.xlu0 %v343_v7, %s1119_s22  ;;  %1013 = vpow2.f32 %v887_v15 }
 0x640   :  { %v945_v9 = vpop.f32.mrf.mxu0 }
 0x64c   :  { %v1014_v16 = vpop.eup %1013 }
 0x64d   :  { %v332_v17 = vadd.f32 1.0, %v1014_v16 }
 0x64f   :  { %1015 = vrcp.f32 %v332_v17 }
 0x65c   :  { %v1016_v18 = vpop.eup %1015 }
 0x65d   :  { %v354_v24 = vsub.f32 1.0, %v1016_v18  ;;  %v360_v26 = vmul.f32 %v1016_v18, %v1216_v62 }
 0x6b1   :  { %v345_v19 = vpop.permute.xlu0 %344 }
 0x6b2   :  { %v347_v20 = vmul.f32 %v1016_v18, %v345_v19 }
 0x6b4   :  { %349 = vrot.lane.b32.xlu1 %v347_v20, %s1119_s22 }
 0x726   :  { %v350_v21 = vpop.permute.xlu1 %349 }
 0x727   :  { %v352_v22 = vadd.f32 %v350_v21, %v280_v13 }
 0x729   :  { %1017 = vtanh.f32 %v352_v22 }
 0x736   :  { %v1018_v23 = vpop.eup %1017 }
 0x737   :  { %356 = vrot.lane.b32.xlu0 %v1018_v23, %s1125_s26 }
 0x7a9   :  { %v357_v25 = vpop.permute.xlu0 %356 }
 0x7aa   :  { %v359_v27 = vmul.f32 %v357_v25, %v354_v24 }
 0x7ac   :  { %v1234_v28 = vadd.f32 %v360_v26, %v359_v27 }
 0x7ae   :  { %v378_v29 = vpack.c.bf16 %v1234_v28, %v1234_v28 }
 0x7b0   :  { %380 = vrot.lane.b32.xlu1 %v378_v29, %s1125_s26 }
 0x822   :  { %v381_v30 = vpop.permute.xlu1 %380 }
 0x823   :  { %951 = vmatmul.mubr.msk.bf16.vlgmr.msra.gmra.mxu1 %vm76_vm2, %v381_v30 }
 0x824   :  { %963 = vmatpush3.bf16.msra.mxu1 %v1164_v1  ;;  %966 = vmatprep.mubr.msk.bf16.mxu1 %vm1122_vm1, %v1121_v0 }
 0x825   :  { %964 = vmatprep.subr.bf16.mxu1 %v1121_v0 }
 0x828   :  { %965 = vmatpush3.bf16.msra.mxu1 %v1167_v2 }
 0x829   :  { %978 = vmatprep.subr.bf16.mxu1 %v1121_v0 }
 0x8e3   :  { %v419_v31 = vpop.f32.mrf.mxu1 }
 0x8e4   :  { %v432_v32 = vadd.f32 %v419_v31, %v1187_v11  ;;  %v425_v40 = vadd.f32 %v419_v31, %v377_v39  ;;  %v570_v31 = vld [vmem:[#allocation3 + $0x5] sm:$0x1] }
 0x8e5   :  { %v952_v33 = vpop.f32.mrf.mxu1 }
 0x8e6   :  { %v440_v34 = vrot.slane %v432_v32, %v1189_v12  ;;  %v889_v41 = vmul.f32 -1.442695, %v425_v40  ;;  %v571_v32 = vunpack.c.l.bf16 %v570_v31 }
 0x8e7   :  { %v422_v35 = vpop.f32.mrf.mxu1 }
 0x8e8   :  { %441 = vrot.lane.b32.xlu0 %v440_v34, %s1119_s22  ;;  %1019 = vpow2.f32 %v889_v41 }
 0x8e9   :  { %v953_v36 = vpop.f32.mrf.mxu1 }
 0x8f5   :  { %v1020_v42 = vpop.eup %1019 }
 0x8f6   :  { %v429_v43 = vadd.f32 1.0, %v1020_v42 }
 0x8f8   :  { %1021 = vrcp.f32 %v429_v43 }
 0x905   :  { %v1022_v44 = vpop.eup %1021 }
 0x906   :  { %v451_v50 = vsub.f32 1.0, %v1022_v44  ;;  %v457_v52 = vmul.f32 %v1022_v44, %v1234_v28 }
 0x95a   :  { %v442_v45 = vpop.permute.xlu0 %441 }
 0x95b   :  { %v444_v46 = vmul.f32 %v1022_v44, %v442_v45 }
 0x95d   :  { %446 = vrot.lane.b32.xlu1 %v444_v46, %s1119_s22 }
 0x9cf   :  { %v447_v47 = vpop.permute.xlu1 %446 }
 0x9d0   :  { %v449_v48 = vadd.f32 %v447_v47, %v377_v39 }
 0x9d2   :  { %1023 = vtanh.f32 %v449_v48 }
 0x9df   :  { %v1024_v49 = vpop.eup %1023 }
 0x9e0   :  { %453 = vrot.lane.b32.xlu0 %v1024_v49, %s1125_s26 }
 0xa52   :  { %v454_v51 = vpop.permute.xlu0 %453 }
 0xa53   :  { %v456_v53 = vmul.f32 %v454_v51, %v451_v50 }
 0xa55   :  { %v1252_v54 = vadd.f32 %v457_v52, %v456_v53 }
 0xa57   :  { %v475_v55 = vpack.c.bf16 %v1252_v54, %v1252_v54 }
 0xa59   :  { %477 = vrot.lane.b32.xlu1 %v475_v55, %s1125_s26  ;;  %v667_v55 = vld [vmem:[#allocation3 + $0x6] sm:$0x1] }
 0xacb   :  { %v478_v56 = vpop.permute.xlu1 %477 }
 0xacc   :  { %959 = vmatmul.mubr.msk.bf16.vlgmr.msra.gmra.mxu0 %vm76_vm2, %v478_v56  ;;  %v668_v56 = vunpack.c.l.bf16 %v667_v55 }
 0xacd   :  { %971 = vmatpush3.bf16.msra.mxu0 %v1164_v1  ;;  %974 = vmatprep.mubr.msk.bf16.mxu0 %vm1122_vm1, %v1121_v0 }
 0xace   :  { %972 = vmatprep.subr.bf16.mxu0 %v1121_v0 }
 0xad1   :  { %973 = vmatpush3.bf16.msra.mxu0 %v1167_v2 }
 0xb8c   :  { %v516_v57 = vpop.f32.mrf.mxu0 }
 0xb8d   :  { %v529_v58 = vadd.f32 %v516_v57, %v1187_v11  ;;  %v522_v5 = vadd.f32 %v516_v57, %v474_v4 }
 0xb8e   :  { %v960_v59 = vpop.f32.mrf.mxu0 }
 0xb8f   :  { %v537_v60 = vrot.slane %v529_v58, %v1189_v12  ;;  %v891_v6 = vmul.f32 -1.442695, %v522_v5 }
 0xb90   :  { %v519_v61 = vpop.f32.mrf.mxu0 }
 0xb91   :  { %538 = vrot.lane.b32.xlu0 %v537_v60, %s1119_s22  ;;  %1025 = vpow2.f32 %v891_v6 }
 0xb92   :  { %v961_v63 = vpop.f32.mrf.mxu0 }
 0xb9e   :  { %v1026_v7 = vpop.eup %1025 }
 0xb9f   :  { %v526_v8 = vadd.f32 1.0, %v1026_v7 }
 0xba1   :  { %1027 = vrcp.f32 %v526_v8 }
 0xbae   :  { %v1028_v9 = vpop.eup %1027 }
 0xbaf   :  { %v548_v17 = vsub.f32 1.0, %v1028_v9  ;;  %v554_v19 = vmul.f32 %v1028_v9, %v1252_v54 }
 0xc03   :  { %v539_v10 = vpop.permute.xlu0 %538 }
 0xc04   :  { %v541_v13 = vmul.f32 %v1028_v9, %v539_v10 }
 0xc06   :  { %543 = vrot.lane.b32.xlu1 %v541_v13, %s1119_s22 }
 0xc78   :  { %v544_v14 = vpop.permute.xlu1 %543 }
 0xc79   :  { %v546_v15 = vadd.f32 %v544_v14, %v474_v4 }
 0xc7b   :  { %1029 = vtanh.f32 %v546_v15 }
 0xc88   :  { %v1030_v16 = vpop.eup %1029 }
 0xc89   :  { %550 = vrot.lane.b32.xlu0 %v1030_v16, %s1125_s26 }
 0xcfb   :  { %v551_v18 = vpop.permute.xlu0 %550 }
 0xcfc   :  { %v553_v20 = vmul.f32 %v551_v18, %v548_v17 }
 0xcfe   :  { %v1269_v21 = vadd.f32 %v554_v19, %v553_v20 }
 0xd00   :  { %v572_v22 = vpack.c.bf16 %v1269_v21, %v1269_v21 }
 0xd02   :  { %574 = vrot.lane.b32.xlu1 %v572_v22, %s1125_s26 }
 0xd74   :  { %v575_v23 = vpop.permute.xlu1 %574 }
 0xd75   :  { %967 = vmatmul.mubr.msk.bf16.vlgmr.msra.gmra.mxu1 %vm76_vm2, %v575_v23  ;;  %v764_v23 = vld [vmem:[#allocation3 + $0x7] sm:$0x1] }
 0xd76   :  { %979 = vmatpush3.bf16.msra.mxu1 %v1164_v1  ;;  %982 = vmatprep.mubr.msk.bf16.mxu1 %vm1122_vm1, %v1121_v0 }
 0xd77   :  { %980 = vmatprep.subr.bf16.mxu1 %v1121_v0 }
 0xd7a   :  { %981 = vmatpush3.bf16.msra.mxu1 %v1167_v2 }
 0xe35   :  { %v613_v24 = vpop.f32.mrf.mxu1 }
 0xe36   :  { %v626_v25 = vadd.f32 %v613_v24, %v1187_v11  ;;  %v619_v1 = vadd.f32 %v613_v24, %v571_v32  ;;  %v765_v24 = vunpack.c.l.bf16 %v764_v23 }
 0xe37   :  { %v968_v26 = vpop.f32.mrf.mxu1 }
 0xe38   :  { %v634_v27 = vrot.slane %v626_v25, %v1189_v12  ;;  %v893_v33 = vmul.f32 -1.442695, %v619_v1  ;;  %v369_v1 = vrot.slane %v1234_v28, %v1189_v12 }
 0xe39   :  { %v616_v29 = vpop.f32.mrf.mxu1 }
 0xe3a   :  { %635 = vrot.lane.b32.xlu0 %v634_v27, %s1119_s22  ;;  %1031 = vpow2.f32 %v893_v33  ;;  %v563_v33 = vrot.slane %v1269_v21, %v1189_v12 }
 0xe3b   :  { %v969_v30 = vpop.f32.mrf.mxu1 }
 0xe47   :  { %v1032_v34 = vpop.eup %1031 }
 0xe48   :  { %v623_v35 = vadd.f32 1.0, %v1032_v34 }
 0xe4a   :  { %1033 = vrcp.f32 %v623_v35 }
 0xe57   :  { %v1034_v0 = vpop.eup %1033 }
 0xe58   :  { %v645_v41 = vsub.f32 1.0, %v1034_v0  ;;  %v651_v43 = vmul.f32 %v1034_v0, %v1269_v21 }
 0xeac   :  { %v636_v2 = vpop.permute.xlu0 %635 }
 0xead   :  { %v638_v36 = vmul.f32 %v1034_v0, %v636_v2 }
 0xeaf   :  { %640 = vrot.lane.b32.xlu1 %v638_v36, %s1119_s22 }
 0xf21   :  { %v641_v38 = vpop.permute.xlu1 %640 }
 0xf22   :  { %v643_v39 = vadd.f32 %v641_v38, %v571_v32  ;;  %v272_v38 = vrot.slane %v1216_v62, %v1189_v12 }
 0xf24   :  { %1035 = vtanh.f32 %v643_v39  ;;  %v466_v39 = vrot.slane %v1252_v54, %v1189_v12 }
 0xf31   :  { %v1036_v40 = vpop.eup %1035 }
 0xf32   :  { %647 = vrot.lane.b32.xlu0 %v1036_v40, %s1125_s26 }
 0xfa4   :  { %v648_v42 = vpop.permute.xlu0 %647 }
 0xfa5   :  { %v650_v44 = vmul.f32 %v648_v42, %v645_v41 }
 0xfa7   :  { %v1286_v45 = vadd.f32 %v651_v43, %v650_v44 }
 0xfa9   :  { %v669_v46 = vpack.c.bf16 %v1286_v45, %v1286_v45  ;;  %v660_v40 = vrot.slane %v1286_v45, %v1189_v12 }
 0xfab   :  { %671 = vrot.lane.b32.xlu1 %v669_v46, %s1125_s26 }
0x101d   :  { %v672_v47 = vpop.permute.xlu1 %671 }
0x101e   :  { %975 = vmatmul.mubr.msk.bf16.vlgmr.msra.gmra.mxu0 %vm76_vm2, %v672_v47 }
0x10de   :  { %v710_v48 = vpop.f32.mrf.mxu0 }
0x10df   :  { %v723_v49 = vadd.f32 %v710_v48, %v1187_v11  ;;  %v716_v57 = vadd.f32 %v710_v48, %v668_v56 }
0x10e0   :  { %v976_v50 = vpop.f32.mrf.mxu0 }
0x10e1   :  { %v731_v51 = vrot.slane %v723_v49, %v1189_v12  ;;  %v895_v58 = vmul.f32 -1.442695, %v716_v57 }
0x10e2   :  { %v713_v52 = vpop.f32.mrf.mxu0 }
0x10e3   :  { %732 = vrot.lane.b32.xlu0 %v731_v51, %s1119_s22  ;;  %1037 = vpow2.f32 %v895_v58 }
0x10e4   :  { %v977_v53 = vpop.f32.mrf.mxu0 }
0x10f0   :  { %v1038_v59 = vpop.eup %1037 }
0x10f1   :  { %v720_v60 = vadd.f32 1.0, %v1038_v59 }
0x10f3   :  { %1039 = vrcp.f32 %v720_v60 }
0x1100   :  { %v1040_v61 = vpop.eup %1039 }
0x1101   :  { %v742_v7 = vsub.f32 1.0, %v1040_v61  ;;  %v748_v9 = vmul.f32 %v1040_v61, %v1286_v45 }
0x1155   :  { %v733_v63 = vpop.permute.xlu0 %732 }
0x1156   :  { %v735_v3 = vmul.f32 %v1040_v61, %v733_v63 }
0x1158   :  { %737 = vrot.lane.b32.xlu1 %v735_v3, %s1119_s22 }
0x11ca   :  { %v738_v4 = vpop.permute.xlu1 %737 }
0x11cb   :  { %v740_v5 = vadd.f32 %v738_v4, %v668_v56 }
0x11cd   :  { %1041 = vtanh.f32 %v740_v5 }
0x11da   :  { %v1042_v6 = vpop.eup %1041 }
0x11db   :  { %744 = vrot.lane.b32.xlu0 %v1042_v6, %s1125_s26 }
0x124d   :  { %v745_v8 = vpop.permute.xlu0 %744 }
0x124e   :  { %v747_v10 = vmul.f32 %v745_v8, %v742_v7 }
0x1250   :  { %v749_v13 = vadd.f32 %v748_v9, %v747_v10 }
0x1252   :  { %v766_v14 = vpack.c.bf16 %v749_v13, %v749_v13  ;;  %v757_v34 = vrot.slane %v749_v13, %v1189_v12 }
0x1254   :  { %768 = vrot.lane.b32.xlu1 %v766_v14, %s1125_s26 }
0x12c6   :  { %v769_v15 = vpop.permute.xlu1 %768 }
0x12c7   :  { %983 = vmatmul.mubr.msk.bf16.vlgmr.msra.gmra.mxu1 %vm76_vm2, %v769_v15 }
0x1387   :  { %v807_v16 = vpop.f32.mrf.mxu1 }
0x1388   :  { %v820_v17 = vadd.f32 %v807_v16, %v1187_v11  ;;  %v813_v25 = vadd.f32 %v807_v16, %v765_v24  ;;  %v175_v11 = vrot.slane %v1198_v37, %v1189_v12 }
0x1389   :  { %v984_v18 = vpop.f32.mrf.mxu1 }
0x138a   :  { %v828_v19 = vrot.slane %v820_v17, %v1189_v12  ;;  %v897_v26 = vmul.f32 -1.442695, %v813_v25 }
0x138b   :  { %v810_v20 = vpop.f32.mrf.mxu1 }
0x138c   :  { %829 = vrot.lane.b32.xlu0 %v828_v19, %s1119_s22  ;;  %1043 = vpow2.f32 %v897_v26 }
0x138d   :  { %v985_v22 = vpop.f32.mrf.mxu1 }
0x1399   :  { %v1044_v27 = vpop.eup %1043 }
0x139a   :  { %v817_v29 = vadd.f32 1.0, %v1044_v27 }
0x139c   :  { %1045 = vrcp.f32 %v817_v29 }
0x13a9   :  { %v1046_v30 = vpop.eup %1045 }
0x13aa   :  { %v839_v41 = vsub.f32 1.0, %v1046_v30  ;;  %v845_v43 = vmul.f32 %v1046_v30, %v749_v13 }
0x13fe   :  { %v830_v31 = vpop.permute.xlu0 %829 }
0x13ff   :  { %v832_v32 = vmul.f32 %v1046_v30, %v830_v31 }
0x1401   :  { %834 = vrot.lane.b32.xlu1 %v832_v32, %s1119_s22 }
0x1405   :  { %176 = vrot.lane.b32.xlu1 %v175_v11, %s1125_s26 }
0x1409   :  { %370 = vrot.lane.b32.xlu1 %v369_v1, %s1125_s26 }
0x140d   :  { %564 = vrot.lane.b32.xlu1 %v563_v33, %s1125_s26 }
0x1411   :  { %758 = vrot.lane.b32.xlu1 %v757_v34, %s1125_s26 }
0x1473   :  { %v835_v35 = vpop.permute.xlu1 %834 }
0x1474   :  { %v837_v0 = vadd.f32 %v835_v35, %v765_v24 }
0x1476   :  { %1047 = vtanh.f32 %v837_v0 }
0x1477   :  { %v177_v37 = vpop.permute.xlu1 %176 }
0x1478   :  { %180 = vst.msk [vmem:[#allocation8] sm:$0x3] %vm48_vm0, %v177_v37 }
0x147b   :  { %v371_v2 = vpop.permute.xlu1 %370 }
0x147c   :  { %374 = vst.msk [vmem:[#allocation8 + $0x4] sm:$0x3] %vm48_vm0, %v371_v2 }
0x147f   :  { %v565_v28 = vpop.permute.xlu1 %564 }
0x1480   :  { %568 = vst.msk [vmem:[#allocation8 + $0x8] sm:$0x3] %vm48_vm0, %v565_v28 }
0x1483   :  { %v1048_v36 = vpop.eup %1047  ;;  %v759_v21 = vpop.permute.xlu1 %758 }
0x1484   :  { %762 = vst.msk [vmem:[#allocation8 + $0xc] sm:$0x3] %vm48_vm0, %v759_v21  ;;  %841 = vrot.lane.b32.xlu0 %v1048_v36, %s1125_s26 }
0x1488   :  { %273 = vrot.lane.b32.xlu0 %v272_v38, %s1125_s26 }
0x148c   :  { %467 = vrot.lane.b32.xlu0 %v466_v39, %s1125_s26 }
0x1490   :  { %661 = vrot.lane.b32.xlu0 %v660_v40, %s1125_s26 }
0x14f6   :  { %v842_v42 = vpop.permute.xlu0 %841 }
0x14f7   :  { %v844_v44 = vmul.f32 %v842_v42, %v839_v41 }
0x14f9   :  { %v846_v46 = vadd.f32 %v845_v43, %v844_v44 }
0x14fa   :  { %v274_v47 = vpop.permute.xlu0 %273 }
0x14fb   :  { %277 = vst.msk [vmem:[#allocation8 + $0x2] sm:$0x3] %vm48_vm0, %v274_v47  ;;  %v854_v62 = vrot.slane %v846_v46, %v1189_v12 }
0x14fd   :  { %855 = vrot.lane.b32.xlu0 %v854_v62, %s1125_s26 }
0x14fe   :  { %v468_v54 = vpop.permute.xlu0 %467 }
0x14ff   :  { %471 = vst.msk [vmem:[#allocation8 + $0x6] sm:$0x3] %vm48_vm0, %v468_v54 }
0x1502   :  { %v662_v48 = vpop.permute.xlu0 %661 }
0x1503   :  { %665 = vst.msk [vmem:[#allocation8 + $0xa] sm:$0x3] %vm48_vm0, %v662_v48 }
0x156f   :  { %v856_v45 = vpop.permute.xlu0 %855 }
0x1570   :  { %859 = vst.msk [vmem:[#allocation8 + $0xe] sm:$0x3] %vm48_vm0, %v856_v45  ;;  %860 = vst.msk [vmem:[#allocation2] sm:$0x3] %vm48_vm0, %v856_v45 }
0x1571   :  { %1100 = shalt.err (!%p1097_p0)
}
0x1572   :  { %s1127_s30 = smov 2  }
0x1573   :  { %872 = dma.vmem_to_hbm [thread:$0]  %s867_s28, 256, %s1344_s3, [#allocation5], %s1124_s2, %s1124_s2, %s1127_s30  }
0x1574   :  { %1113 = dma.done.wait [#allocation5], 256  }
0x1575   :  { %1114 = vsyncadd [#allocation5], 4294967040 }
0x1576   :  { %876 = vsyncpa [#allocation4], 1 }
0x1577   :  { %877 = vsyncpa [#allocation7], 1 }
0x1578   :  { %878 = vsyncpa [#allocation5], 1 }

</bundles_post_ra>
